<compile_context>
chip_gen: v6e
topology: v6e:2x2x1
jax: 0.10.0
libtpu: 0.0.40
codegen_flags: <defaults>
</compile_context>

<pallas_src>
import math

import jax
import jax.numpy as jnp
from jax import lax
from jax.experimental import pallas as pl
from jax.experimental.pallas import tpu as pltpu

BN_EPS = 1e-5


# ---------------------------------------------------------------------------
# VMEM-budget-aware tiling helpers (generation aware).
# ---------------------------------------------------------------------------
def _vmem_capacity_bytes():
    try:
        return int(pltpu.get_tpu_info().vmem_capacity_bytes)
    except Exception:
        return 64 * 1024 * 1024  # conservative fallback (v7x per-TC physical)


def _pick_spatial_tile(total, bytes_per_lane, vmem_cap, max_tile_lanes=None):
    """Largest lane tile such that the double-buffered streams fit in ~half
    of VMEM.  Returns either the full extent or a multiple of 128 (the grid
    uses pl.cdiv, so the tile does NOT need to divide `total`)."""
    budget = max(4 << 20, vmem_cap // 2)
    cap = max(128, budget // max(1, 2 * bytes_per_lane))
    if max_tile_lanes is not None:
        cap = min(cap, max(128, int(max_tile_lanes)))
    if total <= cap:
        return total                      # full-extent block (always legal)
    return max(128, (cap // 128) * 128)


def _vmem_limit(block_bytes, vmem_cap):
    want = 2 * block_bytes + (4 << 20)    # double-buffered blocks + headroom
    lo = 16 << 20
    hi = max(lo, int(vmem_cap * 0.9))
    return int(min(max(want, lo), hi))


def _dot_nt(a, b):
    """a (M, K) . b (N, K)^T  -> (M, N), f32 accumulation on the MXU."""
    return lax.dot_general(a, b, (((1,), (1,)), ((), ())),
                           preferred_element_type=jnp.float32)


# ---------------------------------------------------------------------------
# Kernel 1: tiled, mean-shifted stats pass on the PRE-conv input.
# Per batch element n it accumulates [ G = sum z z^T | s = sum z ] with
# z = x - pivot, as one MXU spatial contraction per tile.
# Output: (N, Cin, Cin+1) partials (reduced over N in JAX) -> v7x can shard
# the leading "parallel" axis across both TensorCores.
# ---------------------------------------------------------------------------
def _make_stats_kernel(hw, ts):
    need_mask = (hw % ts) != 0

    def kernel(x_ref, c_ref, out_ref):
        s = pl.program_id(1)

        @pl.when(s == 0)
        def _init():
            out_ref[...] = jnp.zeros_like(out_ref)

        zc = x_ref[0] - c_ref[...]                       # (Cin, ts)
        if need_mask:
            col = s * ts + lax.broadcasted_iota(jnp.int32, (1, zc.shape[1]), 1)
            zc = jnp.where(col < hw, zc, 0.0)            # zero OOB lanes
        ones = jnp.ones((1, zc.shape[1]), jnp.float32)
        gram = _dot_nt(zc, zc)                           # (Cin, Cin)   MXU
        ssum = _dot_nt(zc, ones)                         # (Cin, 1)     MXU
        out_ref[0] += jnp.concatenate([gram, ssum], axis=1)

    return kernel


def shifted_input_stats(x_flat, pivot, vmem_cap, max_tile_lanes=None):
    """x_flat: (N, Cin, H*W) f32, pivot: (Cin, 1) f32 -> (N, Cin, Cin+1)."""
    N, Cin, HW = x_flat.shape
    ts = _pick_spatial_tile(HW, 4 * Cin, vmem_cap, max_tile_lanes)
    n_s = pl.cdiv(HW, ts)
    block_bytes = 4 * (Cin * ts + Cin + Cin * (Cin + 1))
    return pl.pallas_call(
        _make_stats_kernel(HW, ts),
        out_shape=jax.ShapeDtypeStruct((N, Cin, Cin + 1), jnp.float32),
        grid=(N, n_s),
        in_specs=[
            pl.BlockSpec((1, Cin, ts), lambda n, s: (n, 0, s)),
            pl.BlockSpec((Cin, 1), lambda n, s: (0, 0)),
        ],
        out_specs=pl.BlockSpec((1, Cin, Cin + 1), lambda n, s: (n, 0, 0)),
        compiler_params=pltpu.CompilerParams(
            dimension_semantics=("parallel", "arbitrary"),
            vmem_limit_bytes=_vmem_limit(block_bytes, vmem_cap),
        ),
    )(x_flat, pivot)


# ---------------------------------------------------------------------------
# Kernel 2: fused apply: out = W_cat' @ x_cat + shift_total, one matmul per
# lane-dense output tile (BN scale already folded into W_cat', the sum over
# features is the concatenation along Cin).  Output is written exactly once.
# ---------------------------------------------------------------------------
def _apply_kernel(x_ref, w_ref, shift_ref, o_ref):
    y = jnp.dot(w_ref[...], x_ref[0], preferred_element_type=jnp.float32)
    o_ref[0] = (y + shift_ref[...]).astype(o_ref.dtype)


def fused_apply(x_cat, w_cat, shift, vmem_cap, max_tile_lanes=None):
    N, Ck, out_hw = x_cat.shape
    Cout = w_cat.shape[0]
    in_bytes = x_cat.dtype.itemsize
    bytes_per_lane = in_bytes * Ck + 4 * Cout
    ts = _pick_spatial_tile(out_hw, bytes_per_lane, vmem_cap, max_tile_lanes)
    n_s = pl.cdiv(out_hw, ts)
    block_bytes = (in_bytes * Ck * ts + 4 * Cout * ts
                   + w_cat.size * w_cat.dtype.itemsize + 4 * Cout)
    return pl.pallas_call(
        _apply_kernel,
        out_shape=jax.ShapeDtypeStruct((N, Cout, out_hw), jnp.float32),
        grid=(N, n_s),
        in_specs=[
            pl.BlockSpec((1, Ck, ts), lambda n, s: (n, 0, s)),
            pl.BlockSpec((Cout, Ck), lambda n, s: (0, 0)),
            pl.BlockSpec((Cout, 1), lambda n, s: (0, 0)),
        ],
        out_specs=pl.BlockSpec((1, Cout, ts), lambda n, s: (n, 0, s)),
        compiler_params=pltpu.CompilerParams(
            dimension_semantics=("parallel", "parallel"),
            vmem_limit_bytes=_vmem_limit(block_bytes, vmem_cap),
        ),
    )(x_cat, w_cat, shift)


# ---------------------------------------------------------------------------
# Nearest resize on the small pre-conv input (commutes with conv + affine).
# Integer upsample -> jnp.repeat (broadcast-reshape, near free); otherwise
# row-then-column indexing (no flat minor-axis gather).
# TODO(synk): fold the row gather into the apply kernel's index_map via
# scalar prefetch / pl.Element blocks to remove this HBM roundtrip entirely.
# ---------------------------------------------------------------------------
def _nearest_resize_nchw(x, out_h, out_w):
    _, _, H, W = x.shape
    if out_h % H == 0 and out_w % W == 0:
        x = jnp.repeat(x, out_h // H, axis=2)
        return jnp.repeat(x, out_w // W, axis=3)
    ih = (jnp.arange(out_h) * H) // out_h       # PyTorch 'nearest': floor
    iw = (jnp.arange(out_w) * W) // out_w
    return jnp.take(jnp.take(x, ih, axis=2), iw, axis=3)


# ---------------------------------------------------------------------------
# Parameter init (mirrors nn.Conv2d kaiming_uniform_(a=1) + default bias init
# and BatchNorm2d gamma=1, beta=0).  Weight stored as (Cout, Cin).
# ---------------------------------------------------------------------------
def init_params(key, in_channels, out_channel):
    params = []
    for ch in in_channels:
        key, kw, kb = jax.random.split(key, 3)
        fan_in = ch  # 1x1 kernel
        w_bound = math.sqrt(3.0 / fan_in)        # kaiming_uniform with a=1
        b_bound = 1.0 / math.sqrt(fan_in)
        w = jax.random.uniform(kw, (out_channel, ch), jnp.float32,
                               -w_bound, w_bound)
        b = jax.random.uniform(kb, (out_channel,), jnp.float32,
                               -b_bound, b_bound)
        gamma = jnp.ones((out_channel,), jnp.float32)
        beta = jnp.zeros((out_channel,), jnp.float32)
        params.append((w, b, gamma, beta))
    return params


# ---------------------------------------------------------------------------
# Forward.  Inputs/outputs are NCHW (PyTorch convention), kept native:
# data is processed as (N, C, H*W) so the spatial axis is lane-dense.
# ---------------------------------------------------------------------------
def general_fusion_forward(features_nchw, params, out_shape,
                           max_tile_lanes=None, apply_in_bf16=False):
    N = features_nchw[0].shape[0]
    out_hw = out_shape * out_shape
    vmem_cap = _vmem_capacity_bytes()

    w_scaled_list, shift_list, xg_list = [], [], []
    for x, (w, _bias, gamma, beta) in zip(features_nchw, params):
        _, Cin, H, W = x.shape
        x_flat = x.reshape(N, Cin, H * W)

        # Cheap per-channel pivot (mean of a small prefix) -> mean-shifted
        # single-pass statistics are well conditioned.
        pref = min(H * W, 128)
        pivot = jnp.mean(x_flat[:, :, :pref], axis=(0, 2)).reshape(Cin, 1)

        # Pass 1: Gram/sum stats of the pre-conv input at ORIGINAL resolution.
        gext = jnp.sum(shifted_input_stats(x_flat, pivot, vmem_cap,
                                           max_tile_lanes), axis=0)
        cnt = float(N * H * W)
        s1 = gext[:, Cin] / cnt                      # E[z]      (Cin,)
        s2 = gext[:, :Cin] / cnt                     # E[z z^T]  (Cin, Cin)
        mean_x = pivot[:, 0] + s1
        cov_x = s2 - jnp.outer(s1, s1)

        # Train-mode BN of y = W x (+b): bias is cancelled by the mean
        # subtraction, so it is dropped on purpose.
        # TODO(synk): fold the conv bias into `shift` if eval-mode BN
        # (running statistics) is ever required.
        mean_y = w @ mean_x                                       # (Cout,)
        var_y = jnp.maximum(jnp.sum((w @ cov_x) * w, axis=1), 0.0)
        scale = gamma * lax.rsqrt(var_y + BN_EPS)
        shift = beta - mean_y * scale

        w_scaled_list.append(scale[:, None] * w)      # fold BN scale into W
        shift_list.append(shift)

        # Resize commutes with the per-pixel conv+affine -> resize the small
        # pre-conv input.
        xg = _nearest_resize_nchw(x, out_shape, out_shape)
        xg_list.append(xg.reshape(N, Cin, out_hw))

    # Concatenate along Cin: one matmul with K = sum(Cin), one shift add.
    x_cat = jnp.concatenate(xg_list, axis=1)               # (N, sumCin, out_hw)
    w_cat = jnp.concatenate(w_scaled_list, axis=1)          # (Cout, sumCin)
    shift_total = sum(shift_list)[:, None]                  # (Cout, 1)

    if apply_in_bf16:
        # Halves the dominant HBM read; accuracy drops below the fp32
        # reference's 1e-4 tolerance, so it is opt-in.
        x_cat = x_cat.astype(jnp.bfloat16)
        w_cat = w_cat.astype(jnp.bfloat16)

    out_flat = fused_apply(x_cat, w_cat, shift_total, vmem_cap, max_tile_lanes)
    return out_flat.reshape(N, -1, out_shape, out_shape)    # NCHW


# ---------------------------------------------------------------------------
# Pure-JAX reference (faithful to the PyTorch module, incl. the conv bias and
# two-pass batch statistics).
# ---------------------------------------------------------------------------
def reference_forward(features_nchw, params, out_shape):
    out = None
    for x, (w, b, gamma, beta) in zip(features_nchw, params):
        _, _, H, W = x.shape
        y = jnp.einsum('nchw,dc->ndhw', x, w) + b[None, :, None, None]
        mean = jnp.mean(y, axis=(0, 2, 3), keepdims=True)
        var = jnp.mean((y - mean) ** 2, axis=(0, 2, 3), keepdims=True)
        y = gamma[None, :, None, None] * (y - mean) * lax.rsqrt(var + BN_EPS) \
            + beta[None, :, None, None]
        ih = (jnp.arange(out_shape) * H) // out_shape
        iw = (jnp.arange(out_shape) * W) // out_shape
        y = y[:, :, ih][:, :, :, iw]
        out = y if out is None else out + y
    return out


if __name__ == "__main__":
    key = jax.random.PRNGKey(0)
    in_channels = [4, 8, 6]
    out_channel = 8
    out_shape = 20
    N = 2

    k0, k1, k2, kp = jax.random.split(key, 4)
    # student features at different spatial resolutions (NCHW):
    #   12x12 -> non-integer ratio + masked partial stats tile
    #    8x8  -> single full-extent stats tile
    #   10x10 -> integer 2x upsample (jnp.repeat fast path)
    x0 = jax.random.normal(k0, (N, in_channels[0], 12, 12), jnp.float32)
    x1 = jax.random.normal(k1, (N, in_channels[1], 8, 8), jnp.float32)
    x2 = jax.random.normal(k2, (N, in_channels[2], 10, 10), jnp.float32)
    features = [x0, x1, x2]

    params = init_params(kp, in_channels, out_channel)

    # max_tile_lanes=128 forces multi-tile grids (incl. a masked partial
    # stats tile and a partial apply output tile) at these toy shapes;
    # leave it None in production so tiles are auto-sized from VMEM.
    out = general_fusion_forward(features, params, out_shape,
                                 max_tile_lanes=128)
    out = jax.block_until_ready(out)

    ref = reference_forward(features, params, out_shape)
    assert out.shape == (N, out_channel, out_shape, out_shape)
    assert jnp.allclose(out, ref, atol=1e-4, rtol=1e-4), \
        float(jnp.max(jnp.abs(out - ref)))

    print("KERNEL_OK")
</pallas_src>

<mosaic_0001>
module attributes {stable_mosaic.version = 11 : i64} {
  func.func @kernel(%arg0: i32, %arg1: i32, %arg2: memref<1x4x128xf32, #tpu.memory_space<vmem>>, %arg3: memref<4x1xf32, #tpu.memory_space<vmem>>, %arg4: memref<1x4x5xf32, #tpu.memory_space<vmem>>) attributes {dimension_semantics = [#tpu.dimension_semantics<parallel>, #tpu.dimension_semantics<arbitrary>], iteration_bounds = array<i64: 2, 2>, scalar_prefetch = 0 : i64, scratch_operands = 0 : i64, tpu.core_type = #tpu.core_type<tc>, window_params = [{transform_indices = @transform_0, window_bounds = array<i64: 1, 4, 128>}, {pipeline_mode = #tpu.pipeline_mode<synchronous>, transform_indices = @transform_1, window_bounds = array<i64: 4, 1>}, {transform_indices = @transform_2, window_bounds = array<i64: 1, 4, 5>}]} {
    %c0_i32 = arith.constant 0 : i32
    %0 = arith.cmpi eq, %arg1, %c0_i32 : i32
    %1 = arith.extui %0 : i1 to i32
    %c0_i32_0 = arith.constant 0 : i32
    %2 = arith.cmpi ne, %1, %c0_i32_0 : i32
    scf.if %2 {
      %cst_14 = arith.constant 0.000000e+00 : f32
      %28 = vector.broadcast %cst_14 : f32 to vector<1x4x5xf32>
      %c0_15 = arith.constant 0 : index
      %c0_16 = arith.constant 0 : index
      %c0_17 = arith.constant 0 : index
      %29 = vector.load %arg4[%c0_15, %c0_16, %c0_17] : memref<1x4x5xf32, #tpu.memory_space<vmem>>, vector<1x4x5xf32>
      tpu.vector_store %arg4[%c0_15, %c0_16, %c0_17], %28 {strides = array<i32>} : memref<1x4x5xf32, #tpu.memory_space<vmem>>, vector<1x4x5xf32>,
    } else {
    }
    %c0 = arith.constant 0 : index
    %c0_1 = arith.constant 0 : index
    %c0_2 = arith.constant 0 : index
    %3 = vector.load %arg2[%c0, %c0_1, %c0_2] : memref<1x4x128xf32, #tpu.memory_space<vmem>>, vector<1x4x128xf32>
    %4 = vector.shape_cast %3 : vector<1x4x128xf32> to vector<4x128xf32>
    %c0_3 = arith.constant 0 : index
    %c0_4 = arith.constant 0 : index
    %5 = vector.load %arg3[%c0_3, %c0_4] : memref<4x1xf32, #tpu.memory_space<vmem>>, vector<4x1xf32>
    %6 = vector.broadcast %5 : vector<4x1xf32> to vector<4x128xf32>
    %7 = arith.subf %4, %6 : vector<4x128xf32>
    %c128_i32 = arith.constant 128 : i32
    %8 = arith.muli %arg1, %c128_i32 : i32
    %9 = tpu.iota {dimensions = array<i32: 1>} : vector<1x128xi32>
    %10 = vector.broadcast %8 : i32 to vector<1x128xi32>
    %11 = arith.addi %10, %9 : vector<1x128xi32>
    %c144_i32 = arith.constant 144 : i32
    %12 = vector.broadcast %c144_i32 : i32 to vector<1x128xi32>
    %13 = arith.cmpi slt, %11, %12 : vector<1x128xi32>
    %cst = arith.constant 0.000000e+00 : f32
    %14 = vector.shape_cast %13 : vector<1x128xi1> to vector<1x128xi1>
    %15 = vector.broadcast %14 : vector<1x128xi1> to vector<4x128xi1>
    %16 = vector.broadcast %cst : f32 to vector<4x128xf32>
    %17 = arith.select %15, %7, %16 : vector<4x128xi1>, vector<4x128xf32>
    %cst_5 = arith.constant 1.000000e+00 : f32
    %18 = vector.broadcast %cst_5 : f32 to vector<1x128xf32>
    %cst_6 = arith.constant dense<0.000000e+00> : vector<4x4xf32>
    %19 = tpu.matmul %17, %17, %cst_6 {dimension_numbers = #tpu.dot_dimension_numbers<[1], [1], [0], [0], [0, 0, 1, 0], [], []>} : vector<4x128xf32>, vector<4x128xf32>, vector<4x4xf32> -> vector<4x4xf32>
    %cst_7 = arith.constant dense<0.000000e+00> : vector<4x1xf32>
    %20 = tpu.matmul %17, %18, %cst_7 {dimension_numbers = #tpu.dot_dimension_numbers<[1], [1], [0], [0], [0, 0, 1, 0], [], []>} : vector<4x128xf32>, vector<1x128xf32>, vector<4x1xf32> -> vector<4x1xf32>
    %c0_8 = arith.constant 0 : index
    %c0_9 = arith.constant 0 : index
    %c0_10 = arith.constant 0 : index
    %21 = vector.load %arg4[%c0_8, %c0_9, %c0_10] : memref<1x4x5xf32, #tpu.memory_space<vmem>>, vector<1x4x5xf32>
    %22 = vector.shape_cast %21 : vector<1x4x5xf32> to vector<4x5xf32>
    %23 = tpu.concatenate %19, %20 in 1 : vector<4x4xf32>, vector<4x1xf32> -> vector<4x5xf32>
    %24 = arith.addf %22, %23 : vector<4x5xf32>
    %c0_11 = arith.constant 0 : index
    %c0_12 = arith.constant 0 : index
    %c0_13 = arith.constant 0 : index
    %25 = vector.load %arg4[%c0_11, %c0_12, %c0_13] : memref<1x4x5xf32, #tpu.memory_space<vmem>>, vector<1x4x5xf32>
    %26 = vector.shape_cast %25 : vector<1x4x5xf32> to vector<4x5xf32>
    %27 = vector.shape_cast %24 : vector<4x5xf32> to vector<1x4x5xf32>
    tpu.vector_store %arg4[%c0_11, %c0_12, %c0_13], %27 {strides = array<i32>} : memref<1x4x5xf32, #tpu.memory_space<vmem>>, vector<1x4x5xf32>,
    return
  }
  func.func @transform_0(%arg0: i32, %arg1: i32) -> (i32, i32, i32) {
    %c0_i32 = arith.constant 0 : i32
    %c0_i32_0 = arith.constant 0 : i32
    return %arg0, %c0_i32, %arg1 : i32, i32, i32
  }
  func.func @transform_1(%arg0: i32, %arg1: i32) -> (i32, i32) {
    %c0_i32 = arith.constant 0 : i32
    %c0_i32_0 = arith.constant 0 : i32
    %c0_i32_1 = arith.constant 0 : i32
    return %c0_i32, %c0_i32_0 : i32, i32
  }
  func.func @transform_2(%arg0: i32, %arg1: i32) -> (i32, i32, i32) {
    %c0_i32 = arith.constant 0 : i32
    %c0_i32_0 = arith.constant 0 : i32
    %c0_i32_1 = arith.constant 0 : i32
    return %arg0, %c0_i32, %c0_i32_0 : i32, i32, i32
  }
}

</mosaic_0001>

<bundles_post_ra>
// kernel: tpu_custom_call.1
= control target key start
LH: loop header
LB: loop body
LE: loop exit
PB: predicated region body
PF: predicated region fallthrough
CT: control target
= control target key end

     0   :  { %7 = vsyncpa [#allocation3], 0  ;;  %s873_s0 = inlined_call_operand.hbm [shape: f32[2,4,144], index: 0, kind: input, shape index: {}]   ;;  %s874_s1 = inlined_call_operand.vmem [shape: f32[4,1], index: 1, kind: input, shape index: {}]   ;;  %s875_s2 = inlined_call_operand.hbm [shape: f32[2,4,5], index: 2, kind: output, shape index: {}]  }
   0x1   :  { %9 = vsyncpa [#allocation3 + $0x1], 0 }
   0x2   :  { %10 = vsyncpa [#allocation4], 0 }
   0x3   :  { %12 = vsyncpa [#allocation4 + $0x1], 0  ;;  %s678_s9 = smov 0   ;;  %s680_s10 = smov 0  }
   0x4   :  { %s682_s11 = smov 0   ;;  %s684_s12 = smov 0  }
   0x5   :  { %s686_s13 = smov 0   ;;  %s688_s14 = smov 0  }
   0x6   :  { %s690_s15 = smov 0   ;;  %s692_s16 = smov 0  }
   0x7   :  { %s694_s17 = smov 0   ;;  %s696_s18 = smov 0  }
   0x8   :  { %s698_s19 = smov 0  }
   0x9 LB: > { %s375_s20 = sadd.s32 4294967295, %s655_s19   ;;  %s376_s21 = sadd.s32 4294967294, %s655_s19   ;;  %s655_s19 = sphi %s698_s19, %s18_s19   ;;  %s651_s18 = sphi %s696_s18, %s897_s18   ;;  %s647_s17 = sphi %s694_s17, %s896_s17   ;;  %s643_s16 = sphi %s692_s16, %s895_s16   ;;  %s639_s15 = sphi %s690_s15, %s894_s15   ;;  %s635_s14 = sphi %s688_s14, %s893_s14   ;;  %s631_s13 = sphi %s686_s13, %s892_s13   ;;  %s627_s12 = sphi %s684_s12, %s891_s12   ;;  %s623_s11 = sphi %s682_s11, %s890_s11   ;;  %s619_s10 = sphi %s680_s10, %s889_s10   ;;  %s615_s9 = sphi %s678_s9, %s888_s9  }
   0xa   : > { %s27_s22 = sadd.s32 1, %s647_s17  ;;  %s30_s23 = sadd.s32 1, %s651_s18 }
   0xb   : > { %p28_p0 = scmp.ge.s32.totalorder %s27_s22, 2  ;;  %s39_s24 = sadd.s32 1, %s635_s14 }
   0xc   : > { %p46_p1 = scmp.ne.s32.totalorder %s635_s14, %s631_s13  ;;  %p47_p2 = scmp.eq.s32.totalorder %s655_s19, 0 }
   0xd   : > { %s899_s22 = smov (%p28_p0, %s27_s22), 0  ;;  %s901_s23 = smov (!%p28_p0, %s30_s23), %s651_s18 }
   0xe   : > { %878 = sst [smem:[#allocation8_spill]] %s899_s22  ;;  %s35_s25 = ssub.s32 %s647_s17, %s899_s22 }
   0xf   : > { %p744_p3 = por %p47_p2, %p46_p1  ;;  %p32_p4 = scmp.ge.s32.totalorder %s901_s23, 2 }
  0x10   : > { %p52_p5 = scmp.ne.s32.totalorder %s631_s13, %s627_s12  ;;  %p53_p6 = scmp.eq.s32.totalorder %s375_s20, 0 }
  0x11   : > { %s86_s27 = sadd.s32 1, %s623_s11  ;;  %s903_s23 = smov (%p32_p4, %s901_s23), 0 }
  0x12   : > { %880 = sst [smem:[#allocation9_spill]] %s903_s23  ;;  %p752_p7 = por %p53_p6, %p52_p5 }
  0x13   : > { %p96_p8 = scmp.ne.s32.totalorder %s623_s11, %s619_s10  ;;  %s34_s29 = ssub.s32 %s651_s18, %s903_s23 }
  0x14   : > { %p97_p9 = scmp.eq.s32.totalorder %s375_s20, 3  ;;  %s36_s30 = sor.u32 %s35_s25, %s34_s29 }
  0x15   : > { %p84_p10 = scmp.eq.s32.totalorder %s34_s29, 0  ;;  %p37_p11 = scmp.eq.s32.totalorder %s36_s30, 0 }
  0x16   : > { %p760_p12 = por %p97_p9, %p96_p8  ;;  %p102_p13 = scmp.ne.s32.totalorder %s619_s10, %s615_s9 }
  0x17   : > { %s765_s4 = scalar_select %p84_p10, %s623_s11, %s86_s27  }
  0x18   : > { %s768_s5 = scalar_select %p37_p11, %s635_s14, %s39_s24  }
  0x19   : > { %p103_p0 = scmp.eq.s32.totalorder %s376_s21, 3  ;;  %p412_p1 = scmp.lt.s32.totalorder %s655_s19, 4 }
  0x1a   : > { %s126_s7 = sand.u32 1, %s635_s14   ;;  %s380_s12 = sshll.u32 %s651_s18, 1 }
  0x1b   : > { %p773_p2 = por %p103_p0, %p102_p13  ;;  %s379_s8 = sshll.u32 %s126_s7, 2 }
  0x1c   : > { %s135_s20 = sadd.s32 %s647_s17, %s380_s12  ;;  %s130_s25 = scalar_lea.vmem [#allocation2], %s379_s8 }
  0x1d   : > { %s883_s6 = scalar_select %p773_p2, 1, 0 }
  0x1e   : > { %s139_s29 = sshll.u32 %s130_s25, 4  ;;  %s381_s30 = sshll.u32 %s135_s20, 6  ;;  %s140_s29 = int_to_ptr.vmem [resolvable:$true] %s139_s29 }
  0x1f   : > { %s137_s24 = scalar_lea.hbm %s873_s0, %s381_s30  ;;  %p785_p4 = pnand %p412_p1, %p744_p3 }
  0x20   : > { %p382_p5 = scmp.ge.s32.totalorder %s655_s19, 1  ;;  %p144_p6 = scmp.lt.s32.totalorder %s655_s19, 5 }
  0x21   : > { %s127_s22 = scalar_lea.sflag [#allocation3], %s126_s7  ;;  %p509_p8 = pneg %p785_p4 }
  0x22   : > { %s520_s12 = scalar_lea.vmem %s140_s29, 64  ;;  %s657_s8 = smov [#allocation2]  }
  0x23   : > { %p521_p9 = scmp.ne.s32.totalorder %s140_s29, %s520_s12  ;;  %s525_s20 = sshll.u32 %s657_s8, 4  ;;  %s526_s20 = int_to_ptr.vmem [resolvable:$false] %s525_s20 }
  0x24   : > { %s527_s23 = scalar_lea.vmem %s526_s20, 128  ;;  %p528_p13 = scmp.lt.s32.totalorder %s140_s29, %s526_s20 }
  0x25   : > { %p523_p10 = pnand %p521_p9, %p509_p8  ;;  %p529_p0 = scmp.lt.s32.totalorder %s527_s23, %s520_s12 }
  0x27   : > { %p524_p11 = pneg %p523_p10  ;;  %p530_p3 = por %p529_p0, %p528_p13 }
  0x29   : > { %p531_p1 = pnand %p530_p3, %p524_p11 }
  0x2b   : > { %534 = shalt.err (!%p531_p1)
}
  0x2c   : > { %407 = dma.hbm_to_vmem [thread:$0]  (!%p785_p4), %s137_s24, 64, %s140_s29, %s127_s22  }
  0x2d   : > { %p145_p2 = pnand %p382_p5, %p144_p6 }
  0x2e   : > { %s150_s26 = sand.u32 (!%p145_p2), 1, %s631_s13  }
  0x2f   : > { %148 = sbr.rel (%p145_p2) target bundleno = 402 (0x192), region = 28  ;;  %s383_s7 = sshll.u32 (!%p145_p2), %s150_s26, 2 }
  0x30   : > { %s151_s25 = scalar_lea.sflag (!%p145_p2), [#allocation3], %s150_s26  ;;  %s154_s30 = scalar_lea.vmem (!%p145_p2), [#allocation2], %s383_s7 }
  0x34   : > { %606 = dma.done.wait (%p752_p7), %s151_s25, 64  }
  0x35   : > { %608 = vsyncadd (%p752_p7), %s151_s25, 4294967232  ;;  %s172_s27 = sand.u32 1, %s619_s10   ;;  %p385_p2 = scmp.ne.s32.totalorder %s639_s15, 0 }
  0x36   : > { %s384_s22 = sshll.u32 %s172_s27, 2 }
  0x37   : > { %s807_s29 = scalar_lea.vmem [#allocation5], %s384_s22  ;;  %178 = sbr.rel (%p385_p2) target bundleno = 62 (0x3e), region = 36 }
  0x3c   : > { %vm179_vm0 = vcmask 35840   ;;  %v658_v0 = vmov 0.0  }
  0x3d   : > { %180 = vst.msk [vmem:[%s807_s29] sm:$0xf] %vm179_vm0, %v658_v0 }
  0x3e PF: > { %v182_v1 = vld [vmem:[%s874_s1] sm:$0xf]  ;;  %v659_v2 = vmov 0   ;;  %v660_v3 = vmov 0.0   ;;  %vm661_vm1 = vmmov 0   ;;  %v190_v4 = vlaneseq  ;;  %s386_s28 = sshll.u32 %s639_s15, 7 }
  0x3f   : > { %506 = vset.pattern.permute.xlu0 %v659_v2  ;;  %395 = vmatprep.subr.mxu0 %v660_v3  ;;  %v192_v6 = vstv %s386_s28  ;;  %v181_v8 = vld [vmem:[%s154_s30] sm:$0xf]  ;;  %vm268_vm3 = vcmask 1043456   ;;  %vm273_vm4 = vcmask 31744   ;;  %s390_s15 = sshll.u32 %s643_s16, 6  ;;  %s292_s12 = sshll.u32 %s807_s29, 4  ;;  %s293_s12 = int_to_ptr.vmem [resolvable:$true] %s292_s12 }
  0x40   : > { %185 = vperm.xlu0 %506, %v182_v1   ;;  %397 = vmatprep.mubr.msk.f32.mxu0 %vm661_vm1, %v660_v3  ;;  %v191_v5 = vand.u32 127, %v190_v4  ;;  %vm276_vm5 = vcmask 35840   ;;  %s290_s23 = scalar_lea.hbm %s875_s2, %s390_s15  ;;  %s279_s26 = scalar_lea.sflag [#allocation4], %s172_s27 }
  0x41   : > { %s535_s7 = scalar_lea.vmem %s293_s12, 64  ;;  %s662_s16 = smov [#allocation5]  }
  0x42   : > { %v193_v7 = vadd.s32 %v192_v6, %v191_v5  ;;  %p536_p7 = scmp.ne.s32.totalorder %s293_s12, %s535_s7  ;;  %s539_s25 = sshll.u32 %s662_s16, 4  ;;  %s540_s25 = int_to_ptr.vmem [resolvable:$false] %s539_s25 }
  0x43   : > { %s541_s30 = scalar_lea.vmem %s540_s25, 128  ;;  %p542_p6 = scmp.lt.s32.totalorder %s293_s12, %s540_s25 }
  0x44   : > { %vm194_vm2 = vcmp.lt.s32.totalorder %v193_v7, 144  ;;  %v272_v13 = vld [vmem:[%s807_s29] sm:$0xf]  ;;  %p537_p4 = pnand %p536_p7, %p760_p12  ;;  %p543_p8 = scmp.lt.s32.totalorder %s541_s30, %s535_s7 }
  0x46   : > { %p538_p5 = pneg %p537_p4  ;;  %p544_p9 = por %p543_p8, %p542_p6 }
  0x48   : > { %p545_p10 = pnand %p544_p9, %p538_p5 }
  0xbb   : > { %v186_v9 = vpop.permute.xlu0 %185 }
  0xbc   : > { %v188_v10 = vsub.f32 %v181_v8, %v186_v9 }
  0xbe   : > { %396 = vmatpush3.xpose.msk.msra.mxu0 %vm194_vm2, %v188_v10  ;;  %v197_v11 = vsel %vm194_vm2, %v188_v10, 0.0 }
  0xbf   : > { %v269_v12 = vsel %vm268_vm3, %v197_v11, 0.0 }
  0xc0   : > { %270 = vadd.xlane.f32.xlu0 %v269_v12 }
  0xc1   : > { %398 = vmatmul.mubr.msk.f32.vlgmr.msra.gmra.mxu0 %vm194_vm2, %v188_v10 }
 0x149   : > { %v271_v14 = vpop.xlane.xlu0 %270 }
 0x181   : > { %v264_v15 = vpop.f32.mrf.mxu0 }
 0x182   : > { %v274_v16 = vsel %vm273_vm4, %v264_v15, %v271_v14 }
 0x183   : > { %v275_v17 = vadd.f32 %v274_v16, %v272_v13  ;;  %v399_v18 = vpop.f32.mrf.mxu0 }
 0x185   : > { %277 = vst.msk [vmem:[%s807_s29] sm:$0xf] %vm276_vm5, %v275_v17 }
 0x186   : > { %548 = shalt.err (!%p545_p10)
}
 0x187   : > { %s549_s22 = scalar_lea.hbm %s290_s23, 64  ;;  %s553_s24 = scalar_lea.hbm %s875_s2, 128 }
 0x188   : > { %p550_p11 = scmp.ne.s32.totalorder %s290_s23, %s549_s22  ;;  %p554_p3 = scmp.lt.s32.totalorder %s290_s23, %s875_s2 }
 0x189   : > { %p555_p1 = scmp.lt.s32.totalorder %s553_s24, %s549_s22 }
 0x18a   : > { %p551_p13 = pnand %p550_p11, %p760_p12 }
 0x18b   : > { %p556_p2 = por %p555_p1, %p554_p3 }
 0x18c   : > { %p552_p0 = pneg %p551_p13 }
 0x18e   : > { %p557_p7 = pnand %p556_p2, %p552_p0 }
 0x190   : > { %560 = shalt.err (!%p557_p7)
}
 0x191   : > { %402 = dma.vmem_to_hbm [thread:$0]  (%p760_p12), %s293_s12, 64, %s290_s23, %s279_s26  }
 0x192 PF: > { %p413_p4 = scmp.ge.s32.totalorder %s655_s19, 2  ;;  %s304_s15 = sand.u32 1, %s615_s9  }
 0x193   : > { %p885_p5 = scmp.ne.s32.totalorder %s883_s6, 0  ;;  %s305_s8 = scalar_lea.sflag [#allocation4], %s304_s15 }
 0x195   : > { %p409_p6 = pnand %p413_p4, %p885_p5 }
 0x197   : > { %p410_p8 = pneg %p409_p6 }
 0x199   : > { %610 = dma.done.wait (%p410_p8), %s305_s8, 64  }
 0x19a   : > { %612 = vsyncadd (%p410_p8), %s305_s8, 4294967232  ;;  %s18_s19 = sadd.s32 1, %s655_s19   ;;  %s886_s3 = sld [smem:[#allocation8_spill]] }
 0x19b   : > { %p15_p9 = scmp.ge.s32.totalorder %s18_s19, 6   ;;  %s887_s20 = sld [smem:[#allocation9_spill]] }
 0x19c   : > { %s888_s9 = smov %s619_s10  ;;  %s889_s10 = smov %s623_s11 }
 0x19d   : > { %s890_s11 = smov %s765_s4  ;;  %s891_s12 = smov %s631_s13 }
 0x19e   : > { %s892_s13 = smov %s635_s14  ;;  %s893_s14 = smov %s768_s5 }
 0x19f   : > { %s894_s15 = smov %s647_s17  ;;  %s895_s16 = smov %s651_s18 }
 0x1a0   : > { %s896_s17 = smov %s886_s3  ;;  %17 = sbr.rel (!%p15_p9) target bundleno = 9 (0x9), region = 77 }
 0x1a1   : > { %s897_s18 = smov %s887_s20 }
 0x1a5   :  { %310 = vsyncpa [#allocation3], 1 }
 0x1a6   :  { %312 = vsyncpa [#allocation3 + $0x1], 1 }
 0x1a7   :  { %313 = vsyncpa [#allocation4], 1 }
 0x1a8   :  { %315 = vsyncpa [#allocation4 + $0x1], 1 }

</bundles_post_ra>
